<compile_context>
chip_gen: v5e
topology: v5e:2x2
jax: 0.10.0
libtpu: 0.0.40
codegen_flags: <defaults>
</compile_context>

<pallas_src>
import functools

import jax
import jax.numpy as jnp
from jax.experimental import pallas as pl
from jax.experimental.pallas import tpu as pltpu

_LANE = 128   # pad every fan_out dim to a multiple of this (lane-dense stores)
_ROW = 16     # batch-tile rows rounded to this (bf16 packed sublane tile)


def _round_up(n, m):
    return ((n + m - 1) // m) * m


def _cdiv(a, b):
    return (a + b - 1) // b


def _pad_axis(a, axis, target):
    """Zero-pad `a` along `axis` up to size `target`."""
    cur = a.shape[axis]
    if cur == target:
        return a
    widths = [(0, 0)] * a.ndim
    widths[axis] = (0, target - cur)
    return jnp.pad(a, widths)


def _device_budgets():
    """(tb_max, vmem_limit_bytes) per chip generation; conservative fallback."""
    try:
        kind = jax.devices()[0].device_kind.lower()
    except Exception:
        kind = ""
    if "v7" in kind:                                   # 64 MiB VMEM per TC
        return 512, 48 * 1024 * 1024
    if any(v in kind for v in ("v4", "v5", "v6")):     # 128 MiB VMEM
        return 1024, 100 * 1024 * 1024
    return 512, 48 * 1024 * 1024                       # unknown: conservative


def _batch_tiling(batch, tb_max):
    """Balanced batch tiles: tb multiple of 16, >= 2 grid steps once B is big
    (keeps both v7x TensorCores busy), padding waste bounded."""
    min_steps = 2 if batch >= 512 else 1
    nb = max(min_steps, _cdiv(batch, tb_max))
    tb = _round_up(_cdiv(batch, nb), _ROW)
    return tb, nb, nb * tb


# ------------------------------ kernel body ---------------------------------

def _mlp3_kernel(x_ref, w1_ref, b1_ref, w2_ref, b2_ref, w3_ref, b3_ref, o_ref):
    # x arrives f32; cast to bf16 on the VPU (free) for the MXU.
    x = x_ref[...].astype(jnp.bfloat16)
    # layer1: bf16 x bf16 -> f32 accumulate, bias add in f32
    h1 = jnp.dot(x, w1_ref[...], preferred_element_type=jnp.float32)
    h1 = (h1 + b1_ref[...]).astype(jnp.bfloat16)
    # layer2
    h2 = jnp.dot(h1, w2_ref[...], preferred_element_type=jnp.float32)
    h2 = (h2 + b2_ref[...]).astype(jnp.bfloat16)
    # layer3
    out = jnp.dot(h2, w3_ref[...], preferred_element_type=jnp.float32)
    o_ref[...] = (out + b3_ref[...]).astype(o_ref.dtype)


def _resident_spec(shape, single_buffer):
    """BlockSpec for a weight/bias that stays resident across all grid steps."""
    index_map = lambda i: (0, 0)
    if single_buffer:
        # Constant index_map => multi-buffering buys nothing; one buffer halves
        # the resident-weight VMEM footprint.
        return pl.BlockSpec(shape, index_map, pipeline_mode=pl.Buffered(1))
    return pl.BlockSpec(shape, index_map)


# -------------------------------- wrapper ------------------------------------

def prepare_params(w1, b1, w2, b2, w3, b3):
    """One-time parameter prep (do NOT call per forward): pad every fan_out dim
    to a multiple of 128, cast weights to bf16 (MXU operands) and biases to f32.
    Weights are stored transposed vs. PyTorch: (fan_in, fan_out)."""
    def as_2d(b):
        return b.reshape(1, -1)

    h1p = _round_up(w1.shape[1], _LANE)
    h2p = _round_up(w2.shape[1], _LANE)
    outp = _round_up(w3.shape[1], _LANE)

    w1p = _pad_axis(w1, 1, h1p).astype(jnp.bfloat16)                      # (in, h1p)
    b1p = _pad_axis(as_2d(b1), 1, h1p).astype(jnp.float32)                # (1, h1p)
    w2p = _pad_axis(_pad_axis(w2, 0, h1p), 1, h2p).astype(jnp.bfloat16)   # (h1p, h2p)
    b2p = _pad_axis(as_2d(b2), 1, h2p).astype(jnp.float32)                # (1, h2p)
    w3p = _pad_axis(_pad_axis(w3, 0, h2p), 1, outp).astype(jnp.bfloat16)  # (h2p, outp)
    b3p = _pad_axis(as_2d(b3), 1, outp).astype(jnp.float32)               # (1, outp)
    return w1p, b1p, w2p, b2p, w3p, b3p


@functools.partial(jax.jit, static_argnames=("out_dim", "single_buffer_weights"))
def simple_net_forward(x, w1p, b1p, w2p, b2p, w3p, b3p, *, out_dim,
                       single_buffer_weights=True):
    """x: (B, in_dim); padded params from prepare_params(). Returns (B, out_dim)."""
    batch, in_dim = x.shape
    h1p, h2p, outp = w1p.shape[1], w2p.shape[1], w3p.shape[1]
    out_dtype = x.dtype

    tb_max, vmem_limit = _device_budgets()
    tb, nb, b_pad = _batch_tiling(batch, tb_max)
    x_p = _pad_axis(x, 0, b_pad)   # no dtype cast here: bf16 cast is in-kernel

    grid_spec = pltpu.PrefetchScalarGridSpec(
        num_scalar_prefetch=0,
        grid=(nb,),
        in_specs=[
            pl.BlockSpec((tb, in_dim), lambda i: (i, 0)),      # x: tiled over batch
            _resident_spec(w1p.shape, single_buffer_weights),  # weights/biases resident
            _resident_spec(b1p.shape, single_buffer_weights),
            _resident_spec(w2p.shape, single_buffer_weights),
            _resident_spec(b2p.shape, single_buffer_weights),
            _resident_spec(w3p.shape, single_buffer_weights),
            _resident_spec(b3p.shape, single_buffer_weights),
        ],
        out_specs=pl.BlockSpec((tb, outp), lambda i: (i, 0)),
    )

    flops = 2 * b_pad * (in_dim * h1p + h1p * h2p + h2p * outp)
    bytes_accessed = (
        x_p.size * x_p.dtype.itemsize
        + sum(a.size * a.dtype.itemsize for a in (w1p, b1p, w2p, b2p, w3p, b3p))
        + b_pad * outp * jnp.dtype(out_dtype).itemsize)

    out_padded = pl.pallas_call(
        _mlp3_kernel,
        out_shape=jax.ShapeDtypeStruct((b_pad, outp), out_dtype),
        grid_spec=grid_spec,
        compiler_params=pltpu.CompilerParams(
            dimension_semantics=("parallel",),
            vmem_limit_bytes=vmem_limit,
        ),
        cost_estimate=pl.CostEstimate(
            flops=flops, transcendentals=0, bytes_accessed=bytes_accessed),
    )(x_p, w1p, b1p, w2p, b2p, w3p, b3p)

    return out_padded[:batch, :out_dim]


def init_params(key, in_dim, n_hidden_1, n_hidden_2, out_dim, dtype=jnp.float32):
    """Deterministic init mimicking nn.Linear's U(-1/sqrt(fan_in), 1/sqrt(fan_in)).
    Weights are stored transposed vs. PyTorch: (fan_in, fan_out)."""
    keys = jax.random.split(key, 6)

    def linear(kw, kb, fan_in, fan_out):
        bound = 1.0 / jnp.sqrt(jnp.float32(fan_in))
        w = jax.random.uniform(kw, (fan_in, fan_out), dtype, -bound, bound)
        b = jax.random.uniform(kb, (1, fan_out), dtype, -bound, bound)
        return w, b

    w1, b1 = linear(keys[0], keys[1], in_dim, n_hidden_1)
    w2, b2 = linear(keys[2], keys[3], n_hidden_1, n_hidden_2)
    w3, b3 = linear(keys[4], keys[5], n_hidden_2, out_dim)
    return w1, b1, w2, b2, w3, b3


if __name__ == "__main__":
    # Small shapes consistent with simpleNet(in_dim, n_hidden_1, n_hidden_2, out_dim)
    B, in_dim, n_hidden_1, n_hidden_2, out_dim = 8, 32, 64, 64, 16

    key = jax.random.PRNGKey(0)
    kx, kp = jax.random.split(key)
    x = jax.random.normal(kx, (B, in_dim), dtype=jnp.float32)
    w1, b1, w2, b2, w3, b3 = init_params(kp, in_dim, n_hidden_1, n_hidden_2, out_dim)

    # One-time weight padding/casting (kept out of the per-call forward path).
    prepared = prepare_params(w1, b1, w2, b2, w3, b3)

    try:
        out = jax.block_until_ready(
            simple_net_forward(x, *prepared, out_dim=out_dim))
    except Exception:
        # Fallback if this JAX build rejects pipeline_mode=pl.Buffered(1).
        out = jax.block_until_ready(
            simple_net_forward(x, *prepared, out_dim=out_dim,
                               single_buffer_weights=False))

    assert out.shape == (B, out_dim)

    # Reference mimicking the kernel's numerics (bf16 MXU operands, f32 accum).
    def dense(a, w, b):
        return jnp.dot(a.astype(jnp.bfloat16), w.astype(jnp.bfloat16),
                       preferred_element_type=jnp.float32) + b

    ref_bf16 = dense(dense(dense(x, w1, b1), w2, b2), w3, b3)
    assert jnp.allclose(out, ref_bf16, atol=2e-2, rtol=2e-2)

    # Sanity check against the pure-f32 PyTorch-equivalent forward (looser tol
    # since the kernel intentionally uses bf16 matmul inputs).
    ref_f32 = ((x @ w1 + b1) @ w2 + b2) @ w3 + b3
    assert jnp.allclose(out, ref_f32, atol=5e-2, rtol=5e-2)

    print("KERNEL_OK")
</pallas_src>

<mosaic_0001>
module attributes {stable_mosaic.version = 11 : i64} {
  func.func @_mlp3_kernel(%arg0: i32, %arg1: memref<16x32xf32, #tpu.memory_space<vmem>>, %arg2: memref<32x128xbf16, #tpu.memory_space<vmem>>, %arg3: memref<1x128xf32, #tpu.memory_space<vmem>>, %arg4: memref<128x128xbf16, #tpu.memory_space<vmem>>, %arg5: memref<1x128xf32, #tpu.memory_space<vmem>>, %arg6: memref<128x128xbf16, #tpu.memory_space<vmem>>, %arg7: memref<1x128xf32, #tpu.memory_space<vmem>>, %arg8: memref<16x128xf32, #tpu.memory_space<vmem>>) attributes {dimension_semantics = [#tpu.dimension_semantics<parallel>], iteration_bounds = array<i64: 1>, scalar_prefetch = 0 : i64, scratch_operands = 0 : i64, tpu.core_type = #tpu.core_type<tc>, window_params = [{transform_indices = @transform_0, window_bounds = array<i64: 16, 32>}, {pipeline_mode = #tpu.pipeline_mode<synchronous>, transform_indices = @transform_1, window_bounds = array<i64: 32, 128>}, {pipeline_mode = #tpu.pipeline_mode<synchronous>, transform_indices = @transform_2, window_bounds = array<i64: 1, 128>}, {pipeline_mode = #tpu.pipeline_mode<synchronous>, transform_indices = @transform_3, window_bounds = array<i64: 128, 128>}, {pipeline_mode = #tpu.pipeline_mode<synchronous>, transform_indices = @transform_4, window_bounds = array<i64: 1, 128>}, {pipeline_mode = #tpu.pipeline_mode<synchronous>, transform_indices = @transform_5, window_bounds = array<i64: 128, 128>}, {pipeline_mode = #tpu.pipeline_mode<synchronous>, transform_indices = @transform_6, window_bounds = array<i64: 1, 128>}, {transform_indices = @transform_7, window_bounds = array<i64: 16, 128>}]} {
    %c0 = arith.constant 0 : index
    %c0_0 = arith.constant 0 : index
    %0 = vector.load %arg1[%c0, %c0_0] : memref<16x32xf32, #tpu.memory_space<vmem>>, vector<16x32xf32>
    %1 = arith.truncf %0 : vector<16x32xf32> to vector<16x32xbf16>
    %c0_1 = arith.constant 0 : index
    %c0_2 = arith.constant 0 : index
    %2 = vector.load %arg2[%c0_1, %c0_2] : memref<32x128xbf16, #tpu.memory_space<vmem>>, vector<32x128xbf16>
    %cst = arith.constant dense<0.000000e+00> : vector<16x128xf32>
    %3 = tpu.matmul %1, %2, %cst {dimension_numbers = #tpu.dot_dimension_numbers<[1], [0], [0], [1], [0, 0, 1, 1], [], []>} : vector<16x32xbf16>, vector<32x128xbf16>, vector<16x128xf32> -> vector<16x128xf32>
    %c0_3 = arith.constant 0 : index
    %c0_4 = arith.constant 0 : index
    %4 = vector.load %arg3[%c0_3, %c0_4] : memref<1x128xf32, #tpu.memory_space<vmem>>, vector<1x128xf32>
    %5 = vector.broadcast %4 : vector<1x128xf32> to vector<16x128xf32>
    %6 = arith.addf %3, %5 : vector<16x128xf32>
    %7 = arith.truncf %6 : vector<16x128xf32> to vector<16x128xbf16>
    %c0_5 = arith.constant 0 : index
    %c0_6 = arith.constant 0 : index
    %8 = vector.load %arg4[%c0_5, %c0_6] : memref<128x128xbf16, #tpu.memory_space<vmem>>, vector<128x128xbf16>
    %cst_7 = arith.constant dense<0.000000e+00> : vector<16x128xf32>
    %9 = tpu.matmul %7, %8, %cst_7 {dimension_numbers = #tpu.dot_dimension_numbers<[1], [0], [0], [1], [0, 0, 1, 1], [], []>} : vector<16x128xbf16>, vector<128x128xbf16>, vector<16x128xf32> -> vector<16x128xf32>
    %c0_8 = arith.constant 0 : index
    %c0_9 = arith.constant 0 : index
    %10 = vector.load %arg5[%c0_8, %c0_9] : memref<1x128xf32, #tpu.memory_space<vmem>>, vector<1x128xf32>
    %11 = vector.broadcast %10 : vector<1x128xf32> to vector<16x128xf32>
    %12 = arith.addf %9, %11 : vector<16x128xf32>
    %13 = arith.truncf %12 : vector<16x128xf32> to vector<16x128xbf16>
    %c0_10 = arith.constant 0 : index
    %c0_11 = arith.constant 0 : index
    %14 = vector.load %arg6[%c0_10, %c0_11] : memref<128x128xbf16, #tpu.memory_space<vmem>>, vector<128x128xbf16>
    %cst_12 = arith.constant dense<0.000000e+00> : vector<16x128xf32>
    %15 = tpu.matmul %13, %14, %cst_12 {dimension_numbers = #tpu.dot_dimension_numbers<[1], [0], [0], [1], [0, 0, 1, 1], [], []>} : vector<16x128xbf16>, vector<128x128xbf16>, vector<16x128xf32> -> vector<16x128xf32>
    %c0_13 = arith.constant 0 : index
    %c0_14 = arith.constant 0 : index
    %16 = vector.load %arg7[%c0_13, %c0_14] : memref<1x128xf32, #tpu.memory_space<vmem>>, vector<1x128xf32>
    %17 = vector.broadcast %16 : vector<1x128xf32> to vector<16x128xf32>
    %18 = arith.addf %15, %17 : vector<16x128xf32>
    %c0_15 = arith.constant 0 : index
    %c0_16 = arith.constant 0 : index
    %19 = vector.load %arg8[%c0_15, %c0_16] : memref<16x128xf32, #tpu.memory_space<vmem>>, vector<16x128xf32>
    tpu.vector_store %arg8[%c0_15, %c0_16], %18 {strides = array<i32>} : memref<16x128xf32, #tpu.memory_space<vmem>>, vector<16x128xf32>,
    return
  }
  func.func @transform_0(%arg0: i32) -> (i32, i32) {
    %c0_i32 = arith.constant 0 : i32
    %c0_i32_0 = arith.constant 0 : i32
    return %arg0, %c0_i32 : i32, i32
  }
  func.func @transform_1(%arg0: i32) -> (i32, i32) {
    %c0_i32 = arith.constant 0 : i32
    %c0_i32_0 = arith.constant 0 : i32
    %c0_i32_1 = arith.constant 0 : i32
    return %c0_i32, %c0_i32_0 : i32, i32
  }
  func.func @transform_2(%arg0: i32) -> (i32, i32) {
    %c0_i32 = arith.constant 0 : i32
    %c0_i32_0 = arith.constant 0 : i32
    %c0_i32_1 = arith.constant 0 : i32
    return %c0_i32, %c0_i32_0 : i32, i32
  }
  func.func @transform_3(%arg0: i32) -> (i32, i32) {
    %c0_i32 = arith.constant 0 : i32
    %c0_i32_0 = arith.constant 0 : i32
    %c0_i32_1 = arith.constant 0 : i32
    return %c0_i32, %c0_i32_0 : i32, i32
  }
  func.func @transform_4(%arg0: i32) -> (i32, i32) {
    %c0_i32 = arith.constant 0 : i32
    %c0_i32_0 = arith.constant 0 : i32
    %c0_i32_1 = arith.constant 0 : i32
    return %c0_i32, %c0_i32_0 : i32, i32
  }
  func.func @transform_5(%arg0: i32) -> (i32, i32) {
    %c0_i32 = arith.constant 0 : i32
    %c0_i32_0 = arith.constant 0 : i32
    %c0_i32_1 = arith.constant 0 : i32
    return %c0_i32, %c0_i32_0 : i32, i32
  }
  func.func @transform_6(%arg0: i32) -> (i32, i32) {
    %c0_i32 = arith.constant 0 : i32
    %c0_i32_0 = arith.constant 0 : i32
    %c0_i32_1 = arith.constant 0 : i32
    return %c0_i32, %c0_i32_0 : i32, i32
  }
  func.func @transform_7(%arg0: i32) -> (i32, i32) {
    %c0_i32 = arith.constant 0 : i32
    %c0_i32_0 = arith.constant 0 : i32
    return %arg0, %c0_i32 : i32, i32
  }
}

module attributes {stable_mosaic.version = 11 : i64} {
  func.func @_mlp3_kernel(%arg0: i32, %arg1: memref<16x32xf32, #tpu.memory_space<vmem>>, %arg2: memref<32x128xbf16, #tpu.memory_space<vmem>>, %arg3: memref<1x128xf32, #tpu.memory_space<vmem>>, %arg4: memref<128x128xbf16, #tpu.memory_space<vmem>>, %arg5: memref<1x128xf32, #tpu.memory_space<vmem>>, %arg6: memref<128x128xbf16, #tpu.memory_space<vmem>>, %arg7: memref<1x128xf32, #tpu.memory_space<vmem>>, %arg8: memref<16x128xf32, #tpu.memory_space<vmem>>) attributes {dimension_semantics = [#tpu.dimension_semantics<parallel>], iteration_bounds = array<i64: 1>, scalar_prefetch = 0 : i64, scratch_operands = 0 : i64, tpu.core_type = #tpu.core_type<tc>, window_params = [{transform_indices = @transform_0, window_bounds = array<i64: 16, 32>}, {pipeline_mode = #tpu.pipeline_mode<synchronous>, transform_indices = @transform_1, window_bounds = array<i64: 32, 128>}, {pipeline_mode = #tpu.pipeline_mode<synchronous>, transform_indices = @transform_2, window_bounds = array<i64: 1, 128>}, {pipeline_mode = #tpu.pipeline_mode<synchronous>, transform_indices = @transform_3, window_bounds = array<i64: 128, 128>}, {pipeline_mode = #tpu.pipeline_mode<synchronous>, transform_indices = @transform_4, window_bounds = array<i64: 1, 128>}, {pipeline_mode = #tpu.pipeline_mode<synchronous>, transform_indices = @transform_5, window_bounds = array<i64: 128, 128>}, {pipeline_mode = #tpu.pipeline_mode<synchronous>, transform_indices = @transform_6, window_bounds = array<i64: 1, 128>}, {transform_indices = @transform_7, window_bounds = array<i64: 16, 128>}]} {
    %c0 = arith.constant 0 : index
    %c0_0 = arith.constant 0 : index
    %0 = vector.load %arg1[%c0, %c0_0] : memref<16x32xf32, #tpu.memory_space<vmem>>, vector<16x32xf32>
    %1 = arith.truncf %0 : vector<16x32xf32> to vector<16x32xbf16>
    %c0_1 = arith.constant 0 : index
    %c0_2 = arith.constant 0 : index
    %2 = vector.load %arg2[%c0_1, %c0_2] : memref<32x128xbf16, #tpu.memory_space<vmem>>, vector<32x128xbf16>
    %cst = arith.constant dense<0.000000e+00> : vector<16x128xf32>
    %3 = tpu.matmul %1, %2, %cst {dimension_numbers = #tpu.dot_dimension_numbers<[1], [0], [0], [1], [0, 0, 1, 1], [], []>} : vector<16x32xbf16>, vector<32x128xbf16>, vector<16x128xf32> -> vector<16x128xf32>
    %c0_3 = arith.constant 0 : index
    %c0_4 = arith.constant 0 : index
    %4 = vector.load %arg3[%c0_3, %c0_4] : memref<1x128xf32, #tpu.memory_space<vmem>>, vector<1x128xf32>
    %5 = vector.broadcast %4 : vector<1x128xf32> to vector<16x128xf32>
    %6 = arith.addf %3, %5 : vector<16x128xf32>
    %7 = arith.truncf %6 : vector<16x128xf32> to vector<16x128xbf16>
    %c0_5 = arith.constant 0 : index
    %c0_6 = arith.constant 0 : index
    %8 = vector.load %arg4[%c0_5, %c0_6] : memref<128x128xbf16, #tpu.memory_space<vmem>>, vector<128x128xbf16>
    %cst_7 = arith.constant dense<0.000000e+00> : vector<16x128xf32>
    %9 = tpu.matmul %7, %8, %cst_7 {dimension_numbers = #tpu.dot_dimension_numbers<[1], [0], [0], [1], [0, 0, 1, 1], [], []>} : vector<16x128xbf16>, vector<128x128xbf16>, vector<16x128xf32> -> vector<16x128xf32>
    %c0_8 = arith.constant 0 : index
    %c0_9 = arith.constant 0 : index
    %10 = vector.load %arg5[%c0_8, %c0_9] : memref<1x128xf32, #tpu.memory_space<vmem>>, vector<1x128xf32>
    %11 = vector.broadcast %10 : vector<1x128xf32> to vector<16x128xf32>
    %12 = arith.addf %9, %11 : vector<16x128xf32>
    %13 = arith.truncf %12 : vector<16x128xf32> to vector<16x128xbf16>
    %c0_10 = arith.constant 0 : index
    %c0_11 = arith.constant 0 : index
    %14 = vector.load %arg6[%c0_10, %c0_11] : memref<128x128xbf16, #tpu.memory_space<vmem>>, vector<128x128xbf16>
    %cst_12 = arith.constant dense<0.000000e+00> : vector<16x128xf32>
    %15 = tpu.matmul %13, %14, %cst_12 {dimension_numbers = #tpu.dot_dimension_numbers<[1], [0], [0], [1], [0, 0, 1, 1], [], []>} : vector<16x128xbf16>, vector<128x128xbf16>, vector<16x128xf32> -> vector<16x128xf32>
    %c0_13 = arith.constant 0 : index
    %c0_14 = arith.constant 0 : index
    %16 = vector.load %arg7[%c0_13, %c0_14] : memref<1x128xf32, #tpu.memory_space<vmem>>, vector<1x128xf32>
    %17 = vector.broadcast %16 : vector<1x128xf32> to vector<16x128xf32>
    %18 = arith.addf %15, %17 : vector<16x128xf32>
    %c0_15 = arith.constant 0 : index
    %c0_16 = arith.constant 0 : index
    %19 = vector.load %arg8[%c0_15, %c0_16] : memref<16x128xf32, #tpu.memory_space<vmem>>, vector<16x128xf32>
    tpu.vector_store %arg8[%c0_15, %c0_16], %18 {strides = array<i32>} : memref<16x128xf32, #tpu.memory_space<vmem>>, vector<16x128xf32>,
    return
  }
  func.func @transform_0(%arg0: i32) -> (i32, i32) {
    %c0_i32 = arith.constant 0 : i32
    %c0_i32_0 = arith.constant 0 : i32
    return %arg0, %c0_i32 : i32, i32
  }
  func.func @transform_1(%arg0: i32) -> (i32, i32) {
    %c0_i32 = arith.constant 0 : i32
    %c0_i32_0 = arith.constant 0 : i32
    %c0_i32_1 = arith.constant 0 : i32
    return %c0_i32, %c0_i32_0 : i32, i32
  }
  func.func @transform_2(%arg0: i32) -> (i32, i32) {
    %c0_i32 = arith.constant 0 : i32
    %c0_i32_0 = arith.constant 0 : i32
    %c0_i32_1 = arith.constant 0 : i32
    return %c0_i32, %c0_i32_0 : i32, i32
  }
  func.func @transform_3(%arg0: i32) -> (i32, i32) {
    %c0_i32 = arith.constant 0 : i32
    %c0_i32_0 = arith.constant 0 : i32
    %c0_i32_1 = arith.constant 0 : i32
    return %c0_i32, %c0_i32_0 : i32, i32
  }
  func.func @transform_4(%arg0: i32) -> (i32, i32) {
    %c0_i32 = arith.constant 0 : i32
    %c0_i32_0 = arith.constant 0 : i32
    %c0_i32_1 = arith.constant 0 : i32
    return %c0_i32, %c0_i32_0 : i32, i32
  }
  func.func @transform_5(%arg0: i32) -> (i32, i32) {
    %c0_i32 = arith.constant 0 : i32
    %c0_i32_0 = arith.constant 0 : i32
    %c0_i32_1 = arith.constant 0 : i32
    return %c0_i32, %c0_i32_0 : i32, i32
  }
  func.func @transform_6(%arg0: i32) -> (i32, i32) {
    %c0_i32 = arith.constant 0 : i32
    %c0_i32_0 = arith.constant 0 : i32
    %c0_i32_1 = arith.constant 0 : i32
    return %c0_i32, %c0_i32_0 : i32, i32
  }
  func.func @transform_7(%arg0: i32) -> (i32, i32) {
    %c0_i32 = arith.constant 0 : i32
    %c0_i32_0 = arith.constant 0 : i32
    return %arg0, %c0_i32 : i32, i32
  }
}

</mosaic_0001>

<bundles_post_ra>
// kernel: simple_net_forward.1
= control target key start
LH: loop header
LB: loop body
LE: loop exit
PB: predicated region body
PF: predicated region fallthrough
CT: control target
= control target key end

     0   :  { %12 = vsyncpa [#allocation3], 0  ;;  %s501_s0 = inlined_call_operand.vmem [shape: f32[16,32], index: 0, kind: input, shape index: {}]   ;;  %s502_s1 = inlined_call_operand.vmem [shape: bf16[32,128], index: 1, kind: input, shape index: {}]   ;;  %s503_s2 = inlined_call_operand.vmem [shape: f32[1,128], index: 2, kind: input, shape index: {}]   ;;  %s504_s3 = inlined_call_operand.hbm [shape: bf16[128,128], index: 3, kind: input, shape index: {}]   ;;  %s505_s4 = inlined_call_operand.vmem [shape: f32[1,128], index: 4, kind: input, shape index: {}]   ;;  %s506_s5 = inlined_call_operand.hbm [shape: bf16[128,128], index: 5, kind: input, shape index: {}]   ;;  %s507_s6 = inlined_call_operand.vmem [shape: f32[1,128], index: 6, kind: input, shape index: {}]   ;;  %s508_s7 = inlined_call_operand.vmem [shape: f32[16,128], index: 7, kind: output, shape index: {}]  }
   0x1   :  { %s24_s26 = sshll.u32 %s504_s3, 4  ;;  %s25_s26 = int_to_ptr.hbm [resolvable:$true] %s24_s26 }
   0x2   :  { %13 = vsyncpa [#allocation5], 0  ;;  %s424_s27 = smov [#allocation2]   ;;  %s39_s8 = sshll.u32 %s506_s5, 4  ;;  %s40_s8 = int_to_ptr.hbm [resolvable:$true] %s39_s8 }
   0x3   :  { %s26_s28 = sshll.u32 %s424_s27, 4  ;;  %s425_s9 = smov 64   ;;  %s27_s28 = int_to_ptr.vmem [resolvable:$true] %s26_s28 }
   0x4   :  { %s426_s10 = smov 4   ;;  %s427_s11 = smov [#allocation4]  }
   0x5   :  { %32 = dma.hbm_to_vmem [thread:$0]  %s25_s26, 1024, %s27_s28, [#allocation3], %s425_s9, %s425_s9, %s426_s10  }
   0x6   :  { %s41_s12 = sshll.u32 %s427_s11, 4  ;;  %s42_s12 = int_to_ptr.vmem [resolvable:$true] %s41_s12 }
   0x7   :  { %47 = dma.hbm_to_vmem [thread:$0]  %s40_s8, 1024, %s42_s12, [#allocation5], %s425_s9, %s425_s9, %s426_s10  }
   0x8   :  { %420 = dma.done.wait [#allocation3], 1024  }
   0x9   :  { %421 = vsyncadd [#allocation3], 4294966272 }
   0xa   :  { %422 = dma.done.wait [#allocation5], 1024  }
   0xb   :  { %423 = vsyncadd [#allocation5], 4294966272  ;;  %v348_v0 = vld [vmem:[%s502_s1 + $0x8] sm:$0xff]  ;;  %v356_v1 = vld [vmem:[#allocation2 + $0x38] sm:$0xff]  ;;  %vm82_vm0 = vcmask 261120  }
   0xc   :  { %92 = vmatpush.bf16.msra.mxu0 %v348_v0  ;;  %v347_v2 = vld [vmem:[%s502_s1] sm:$0xff]  ;;  %v60_v4 = vld [vmem:[%s501_s0 + $0x8] sm:$0xff]  ;;  %169 = vmatpush.bf16.msra.mxu1 %v356_v1  ;;  %v355_v5 = vld [vmem:[#allocation2 + $0x30] sm:$0xff] }
   0xd   :  { %v59_v3 = vld [vmem:[%s501_s0] sm:$0xff]  ;;  %v354_v7 = vld [vmem:[#allocation2 + $0x28] sm:$0xff]  ;;  %v352_v9 = vld [vmem:[#allocation2 + $0x18] sm:$0xff] }
   0xe   :  { %v61_v6 = vpack.c.bf16 %v60_v4, %v59_v3  ;;  %v353_v8 = vld [vmem:[#allocation2 + $0x20] sm:$0xff]  ;;  %v351_v10 = vld [vmem:[#allocation2 + $0x10] sm:$0xff]  ;;  %v350_v11 = vld [vmem:[#allocation2 + $0x8] sm:$0xff] }
   0xf   :  { %v349_v12 = vld [vmem:[#allocation2] sm:$0xff]  ;;  %v364_v13 = vld [vmem:[#allocation4 + $0x38] sm:$0xff]  ;;  %v363_v14 = vld [vmem:[#allocation4 + $0x30] sm:$0xff] }
  0x10   :  { %93 = vmatpush.bf16.msra.mxu0 %v347_v2  ;;  %170 = vmatpush.bf16.msra.mxu1 %v355_v5  ;;  %v362_v15 = vld [vmem:[#allocation4 + $0x28] sm:$0xff]  ;;  %v361_v16 = vld [vmem:[#allocation4 + $0x20] sm:$0xff]  ;;  %v360_v17 = vld [vmem:[#allocation4 + $0x18] sm:$0xff] }
  0x11   :  { %252 = vmatpush.bf16.msra.mxu2 %v364_v13  ;;  %v369_v19 = vld [vmem:[%s503_s2] ss:$0 sm:$0xff]  ;;  %v359_v24 = vld [vmem:[#allocation4 + $0x10] sm:$0xff]  ;;  %v358_v25 = vld [vmem:[#allocation4 + $0x8] sm:$0xff] }
  0x12   :  { %v357_v26 = vld [vmem:[#allocation4] sm:$0xff] }
  0x13   :  { %282 = vmatmul.msk.bf16.vlgmr.msra.gmra.mxu0 %vm82_vm0, %v61_v6  ;;  %v370_v28 = vld [vmem:[%s505_s4] ss:$0 sm:$0xff] }
  0x14   :  { %171 = vmatpush.bf16.msra.mxu1 %v354_v7  ;;  %v371_v33 = vld [vmem:[%s507_s6] ss:$0 sm:$0xff] }
  0x15   :  { %253 = vmatpush.bf16.msra.mxu2 %v363_v14 }
  0x18   :  { %172 = vmatpush.bf16.msra.mxu1 %v353_v8 }
  0x19   :  { %254 = vmatpush.bf16.msra.mxu2 %v362_v15 }
  0x1c   :  { %173 = vmatpush.bf16.msra.mxu1 %v352_v9 }
  0x1d   :  { %255 = vmatpush.bf16.msra.mxu2 %v361_v16 }
  0x20   :  { %174 = vmatpush.bf16.msra.mxu1 %v351_v10 }
  0x21   :  { %256 = vmatpush.bf16.msra.mxu2 %v360_v17 }
  0x24   :  { %175 = vmatpush.bf16.msra.mxu1 %v350_v11 }
  0x25   :  { %257 = vmatpush.bf16.msra.mxu2 %v359_v24 }
  0x28   :  { %176 = vmatpush.bf16.msra.mxu1 %v349_v12 }
  0x29   :  { %258 = vmatpush.bf16.msra.mxu2 %v358_v25 }
  0x2d   :  { %259 = vmatpush.bf16.msra.mxu2 %v357_v26 }
  0x90   :  { %v95_v18 = vpop.f32.mrf.mxu0 }
  0x91   :  { %v96_v21 = vadd.f32 %v369_v19, %v95_v18 }
  0x98   :  { %v97_v20 = vpop.f32.mrf.mxu0 }
  0x99   :  { %v98_v22 = vadd.f32 %v369_v19, %v97_v20 }
  0x9b   :  { %v100_v23 = vpack.c.bf16 %v98_v22, %v96_v21 }
  0x9d   :  { %177 = vmatmul.bf16.vlgmr.msra.gmra.mxu1 %v100_v23 }
 0x11a   :  { %v178_v27 = vpop.f32.mrf.mxu1 }
 0x11b   :  { %v179_v30 = vadd.f32 %v370_v28, %v178_v27 }
 0x122   :  { %v180_v29 = vpop.f32.mrf.mxu1 }
 0x123   :  { %v181_v31 = vadd.f32 %v370_v28, %v180_v29 }
 0x125   :  { %v183_v32 = vpack.c.bf16 %v181_v31, %v179_v30 }
 0x127   :  { %260 = vmatmul.bf16.vlgmr.msra.gmra.mxu2 %v183_v32 }
 0x1aa   :  { %v261_v34 = vpop.f32.mrf.mxu2 }
 0x1ab   :  { %v262_v35 = vadd.f32 %v371_v33, %v261_v34 }
 0x1ad   :  { %266 = vst [vmem:[%s508_s7] sm:$0xff] %v262_v35 }
 0x1b2   :  { %v263_v36 = vpop.f32.mrf.mxu2 }
 0x1b3   :  { %v264_v37 = vadd.f32 %v371_v33, %v263_v36 }
 0x1b5   :  { %267 = vst [vmem:[%s508_s7 + $0x8] sm:$0xff] %v264_v37 }
 0x1b6   :  { %272 = vsyncpa [#allocation3], 1 }
 0x1b7   :  { %273 = vsyncpa [#allocation5], 1 }

// kernel: simple_net_forward.1
= control target key start
LH: loop header
LB: loop body
LE: loop exit
PB: predicated region body
PF: predicated region fallthrough
CT: control target
= control target key end

     0   :  { %12 = vsyncpa [#allocation3], 0  ;;  %s501_s0 = inlined_call_operand.vmem [shape: f32[16,32], index: 0, kind: input, shape index: {}]   ;;  %s502_s1 = inlined_call_operand.vmem [shape: bf16[32,128], index: 1, kind: input, shape index: {}]   ;;  %s503_s2 = inlined_call_operand.vmem [shape: f32[1,128], index: 2, kind: input, shape index: {}]   ;;  %s504_s3 = inlined_call_operand.hbm [shape: bf16[128,128], index: 3, kind: input, shape index: {}]   ;;  %s505_s4 = inlined_call_operand.vmem [shape: f32[1,128], index: 4, kind: input, shape index: {}]   ;;  %s506_s5 = inlined_call_operand.hbm [shape: bf16[128,128], index: 5, kind: input, shape index: {}]   ;;  %s507_s6 = inlined_call_operand.vmem [shape: f32[1,128], index: 6, kind: input, shape index: {}]   ;;  %s508_s7 = inlined_call_operand.vmem [shape: f32[16,128], index: 7, kind: output, shape index: {}]  }
   0x1   :  { %s24_s26 = sshll.u32 %s504_s3, 4  ;;  %s25_s26 = int_to_ptr.hbm [resolvable:$true] %s24_s26 }
   0x2   :  { %13 = vsyncpa [#allocation5], 0  ;;  %s424_s27 = smov [#allocation2]   ;;  %s39_s8 = sshll.u32 %s506_s5, 4  ;;  %s40_s8 = int_to_ptr.hbm [resolvable:$true] %s39_s8 }
   0x3   :  { %s26_s28 = sshll.u32 %s424_s27, 4  ;;  %s425_s9 = smov 64   ;;  %s27_s28 = int_to_ptr.vmem [resolvable:$true] %s26_s28 }
   0x4   :  { %s426_s10 = smov 4   ;;  %s427_s11 = smov [#allocation4]  }
   0x5   :  { %32 = dma.hbm_to_vmem [thread:$0]  %s25_s26, 1024, %s27_s28, [#allocation3], %s425_s9, %s425_s9, %s426_s10  }
   0x6   :  { %s41_s12 = sshll.u32 %s427_s11, 4  ;;  %s42_s12 = int_to_ptr.vmem [resolvable:$true] %s41_s12 }
   0x7   :  { %47 = dma.hbm_to_vmem [thread:$0]  %s40_s8, 1024, %s42_s12, [#allocation5], %s425_s9, %s425_s9, %s426_s10  }
   0x8   :  { %420 = dma.done.wait [#allocation3], 1024  }
   0x9   :  { %421 = vsyncadd [#allocation3], 4294966272 }
   0xa   :  { %422 = dma.done.wait [#allocation5], 1024  }
   0xb   :  { %423 = vsyncadd [#allocation5], 4294966272  ;;  %v348_v0 = vld [vmem:[%s502_s1 + $0x8] sm:$0xff]  ;;  %v356_v1 = vld [vmem:[#allocation2 + $0x38] sm:$0xff]  ;;  %vm82_vm0 = vcmask 261120  }
   0xc   :  { %92 = vmatpush.bf16.msra.mxu0 %v348_v0  ;;  %v347_v2 = vld [vmem:[%s502_s1] sm:$0xff]  ;;  %v60_v4 = vld [vmem:[%s501_s0 + $0x8] sm:$0xff]  ;;  %169 = vmatpush.bf16.msra.mxu1 %v356_v1  ;;  %v355_v5 = vld [vmem:[#allocation2 + $0x30] sm:$0xff] }
   0xd   :  { %v59_v3 = vld [vmem:[%s501_s0] sm:$0xff]  ;;  %v354_v7 = vld [vmem:[#allocation2 + $0x28] sm:$0xff]  ;;  %v352_v9 = vld [vmem:[#allocation2 + $0x18] sm:$0xff] }
   0xe   :  { %v61_v6 = vpack.c.bf16 %v60_v4, %v59_v3  ;;  %v353_v8 = vld [vmem:[#allocation2 + $0x20] sm:$0xff]  ;;  %v351_v10 = vld [vmem:[#allocation2 + $0x10] sm:$0xff]  ;;  %v350_v11 = vld [vmem:[#allocation2 + $0x8] sm:$0xff] }
   0xf   :  { %v349_v12 = vld [vmem:[#allocation2] sm:$0xff]  ;;  %v364_v13 = vld [vmem:[#allocation4 + $0x38] sm:$0xff]  ;;  %v363_v14 = vld [vmem:[#allocation4 + $0x30] sm:$0xff] }
  0x10   :  { %93 = vmatpush.bf16.msra.mxu0 %v347_v2  ;;  %170 = vmatpush.bf16.msra.mxu1 %v355_v5  ;;  %v362_v15 = vld [vmem:[#allocation4 + $0x28] sm:$0xff]  ;;  %v361_v16 = vld [vmem:[#allocation4 + $0x20] sm:$0xff]  ;;  %v360_v17 = vld [vmem:[#allocation4 + $0x18] sm:$0xff] }
  0x11   :  { %252 = vmatpush.bf16.msra.mxu2 %v364_v13  ;;  %v369_v19 = vld [vmem:[%s503_s2] ss:$0 sm:$0xff]  ;;  %v359_v24 = vld [vmem:[#allocation4 + $0x10] sm:$0xff]  ;;  %v358_v25 = vld [vmem:[#allocation4 + $0x8] sm:$0xff] }
  0x12   :  { %v357_v26 = vld [vmem:[#allocation4] sm:$0xff] }
  0x13   :  { %282 = vmatmul.msk.bf16.vlgmr.msra.gmra.mxu0 %vm82_vm0, %v61_v6  ;;  %v370_v28 = vld [vmem:[%s505_s4] ss:$0 sm:$0xff] }
  0x14   :  { %171 = vmatpush.bf16.msra.mxu1 %v354_v7  ;;  %v371_v33 = vld [vmem:[%s507_s6] ss:$0 sm:$0xff] }
  0x15   :  { %253 = vmatpush.bf16.msra.mxu2 %v363_v14 }
  0x18   :  { %172 = vmatpush.bf16.msra.mxu1 %v353_v8 }
  0x19   :  { %254 = vmatpush.bf16.msra.mxu2 %v362_v15 }
  0x1c   :  { %173 = vmatpush.bf16.msra.mxu1 %v352_v9 }
  0x1d   :  { %255 = vmatpush.bf16.msra.mxu2 %v361_v16 }
  0x20   :  { %174 = vmatpush.bf16.msra.mxu1 %v351_v10 }
  0x21   :  { %256 = vmatpush.bf16.msra.mxu2 %v360_v17 }
  0x24   :  { %175 = vmatpush.bf16.msra.mxu1 %v350_v11 }
  0x25   :  { %257 = vmatpush.bf16.msra.mxu2 %v359_v24 }
  0x28   :  { %176 = vmatpush.bf16.msra.mxu1 %v349_v12 }
  0x29   :  { %258 = vmatpush.bf16.msra.mxu2 %v358_v25 }
  0x2d   :  { %259 = vmatpush.bf16.msra.mxu2 %v357_v26 }
  0x90   :  { %v95_v18 = vpop.f32.mrf.mxu0 }
  0x91   :  { %v96_v21 = vadd.f32 %v369_v19, %v95_v18 }
  0x98   :  { %v97_v20 = vpop.f32.mrf.mxu0 }
  0x99   :  { %v98_v22 = vadd.f32 %v369_v19, %v97_v20 }
  0x9b   :  { %v100_v23 = vpack.c.bf16 %v98_v22, %v96_v21 }
  0x9d   :  { %177 = vmatmul.bf16.vlgmr.msra.gmra.mxu1 %v100_v23 }
 0x11a   :  { %v178_v27 = vpop.f32.mrf.mxu1 }
 0x11b   :  { %v179_v30 = vadd.f32 %v370_v28, %v178_v27 }
 0x122   :  { %v180_v29 = vpop.f32.mrf.mxu1 }
 0x123   :  { %v181_v31 = vadd.f32 %v370_v28, %v180_v29 }
 0x125   :  { %v183_v32 = vpack.c.bf16 %v181_v31, %v179_v30 }
 0x127   :  { %260 = vmatmul.bf16.vlgmr.msra.gmra.mxu2 %v183_v32 }
 0x1aa   :  { %v261_v34 = vpop.f32.mrf.mxu2 }
 0x1ab   :  { %v262_v35 = vadd.f32 %v371_v33, %v261_v34 }
 0x1ad   :  { %266 = vst [vmem:[%s508_s7] sm:$0xff] %v262_v35 }
 0x1b2   :  { %v263_v36 = vpop.f32.mrf.mxu2 }
 0x1b3   :  { %v264_v37 = vadd.f32 %v371_v33, %v263_v36 }
 0x1b5   :  { %267 = vst [vmem:[%s508_s7 + $0x8] sm:$0xff] %v264_v37 }
 0x1b6   :  { %272 = vsyncpa [#allocation3], 1 }
 0x1b7   :  { %273 = vsyncpa [#allocation5], 1 }

</bundles_post_ra>
